<compile_context>
chip_gen: v7x
topology: tpu7x:2x2x1
jax: 0.10.0
libtpu: 0.0.40
codegen_flags: <defaults>
</compile_context>

<pallas_src>
import jax
import jax.numpy as jnp
from jax import lax
from jax.experimental import pallas as pl
from jax.experimental.pallas import tpu as pltpu

DIM = 32                      # embedding dim
NUM_HEADS = 8
HEAD_DIM = DIM // NUM_HEADS   # 4
SCALE = HEAD_DIM ** -0.5
MLP_HIDDEN = int(DIM * 4.0)   # mlp_ratio = 4.0
LN_EPS = 1e-5


def _head_onehot(shape, c_dim, h_dim):
    """One-hot head-membership matrix: 1.0 where channel c belongs to head h."""
    c = lax.broadcasted_iota(jnp.int32, shape, c_dim)
    h = lax.broadcasted_iota(jnp.int32, shape, h_dim)
    d = c - h * HEAD_DIM
    return ((d >= 0) & (d < HEAD_DIM)).astype(jnp.float32)


def _block_kernel(x_ref, txt_ref, wq_ref, wk_ref, wv_ref, wproj_ref, bproj_ref,
                  gamma_ref, beta_ref, w1_ref, b1_ref, w2_ref, b2_ref, o_ref):
    x = x_ref[...].astype(jnp.float32)            # (bb, C)
    txt = txt_ref[...].astype(jnp.float32)        # (T, C)
    bb, C = x.shape
    T = txt.shape[0]

    # --- q / k / v projections (qkv_bias=False; softmax scale folded in wq) ---
    q = jnp.dot(x, wq_ref[...], preferred_element_type=jnp.float32)    # (bb, C)
    k = jnp.dot(txt, wk_ref[...], preferred_element_type=jnp.float32)  # (T, C)
    v = jnp.dot(txt, wv_ref[...], preferred_element_type=jnp.float32)  # (T, C)

    # Constant head grouping matrices (built from iota; no HBM traffic).
    pool = _head_onehot((C, NUM_HEADS), 0, 1)      # (C, H)
    expand = _head_onehot((NUM_HEADS, C), 1, 0)    # (H, C)

    # --- multi-head cross attention, all heads at once ---
    # s[b, t, h] = sum_{c in head h} q[b, c] * k[t, c]
    qk = (q[:, None, :] * k[None, :, :]).reshape(bb * T, C)            # (bb*T, C)
    s = jnp.dot(qk, pool, preferred_element_type=jnp.float32)          # (bb*T, H)
    s = s.reshape(bb, T, NUM_HEADS)                                    # (bb, T, H)

    # single softmax over the key axis (axis=1) for all heads
    m = jnp.max(s, axis=1, keepdims=True)
    p = jnp.exp(s - m)
    denom = jnp.sum(p, axis=1, keepdims=True)
    p = p * pl.reciprocal(denom, approx=True)                          # EUP divide

    # attention output o[b, c] = sum_t p[b, t, head(c)] * v[t, c]
    p_full = jnp.dot(p.reshape(bb * T, NUM_HEADS), expand,
                     preferred_element_type=jnp.float32)               # (bb*T, C)
    attn = jnp.sum(p_full.reshape(bb, T, C) * v[None, :, :], axis=1)   # (bb, C)

    attn_out = jnp.dot(attn, wproj_ref[...],
                       preferred_element_type=jnp.float32) + bproj_ref[...]
    x1 = x + attn_out                                                  # residual 1

    # --- LayerNorm (norm2) ---
    mu = jnp.mean(x1, axis=-1, keepdims=True)
    var = jnp.mean((x1 - mu) ** 2, axis=-1, keepdims=True)
    xn = (x1 - mu) * lax.rsqrt(var + LN_EPS)
    xn = xn * gamma_ref[...] + beta_ref[...]

    # --- MLP: fc1 -> GELU(exact) -> fc2 ---
    h1 = jnp.dot(xn, w1_ref[...], preferred_element_type=jnp.float32) + b1_ref[...]
    h1 = 0.5 * h1 * (1.0 + lax.erf(h1 * (2.0 ** -0.5)))
    y = jnp.dot(h1, w2_ref[...], preferred_element_type=jnp.float32) + b2_ref[...]

    o_ref[...] = (x1 + y).astype(o_ref.dtype)                          # residual 2


def cross_attention_text_proj_block(x, text_feat, params, *, block_b=256):
    """x: (B, C) queries; text_feat: (T, C). params['wq'] must be pre-scaled."""
    B, C = x.shape
    # Batch tile: full batch if small / not evenly divisible, else a
    # multiple-of-8 tile so the parallel batch axis can be split across
    # TensorCores (v7x megacore) without re-DMAing the resident weights.
    bb = block_b if (B > block_b and B % block_b == 0) else B
    grid = (B // bb,)

    weights = (params["wq"], params["wk"], params["wv"], params["wproj"],
               params["bproj"], params["gamma"], params["beta"],
               params["w1"], params["b1"], params["w2"], params["b2"])

    row_spec = pl.BlockSpec((bb, C), lambda i: (i, 0))
    const2d = lambda a: pl.BlockSpec(a.shape, lambda i: (0, 0))  # VMEM-resident

    return pl.pallas_call(
        _block_kernel,
        out_shape=jax.ShapeDtypeStruct((B, C), x.dtype),
        grid=grid,
        in_specs=[row_spec, const2d(text_feat)] + [const2d(w) for w in weights],
        out_specs=row_spec,
        compiler_params=pltpu.CompilerParams(
            dimension_semantics=("parallel",)),
    )(x, text_feat, *weights)


def _ref_forward(x, text, p):
    """Pure-JAX mirror of the PyTorch forward (uses unscaled wq) for checking."""
    B, C = x.shape
    T = text.shape[0]
    q = x @ p["wq"]
    k = text @ p["wk"]
    v = text @ p["wv"]
    qh = q.reshape(B, NUM_HEADS, HEAD_DIM)
    kh = k.reshape(T, NUM_HEADS, HEAD_DIM)
    vh = v.reshape(T, NUM_HEADS, HEAD_DIM)
    s = jnp.einsum("bhd,thd->bht", qh, kh) * SCALE
    a = jax.nn.softmax(s, axis=-1)
    o = jnp.einsum("bht,thd->bhd", a, vh).reshape(B, C)
    o = o @ p["wproj"] + p["bproj"][0]
    x1 = x + o
    mu = x1.mean(-1, keepdims=True)
    var = ((x1 - mu) ** 2).mean(-1, keepdims=True)
    xn = (x1 - mu) / jnp.sqrt(var + LN_EPS) * p["gamma"][0] + p["beta"][0]
    h = xn @ p["w1"] + p["b1"][0]
    h = 0.5 * h * (1.0 + jax.lax.erf(h / jnp.sqrt(2.0)))
    y = h @ p["w2"] + p["b2"][0]
    return x1 + y


if __name__ == "__main__":
    key = jax.random.PRNGKey(0)
    keys = jax.random.split(key, 10)
    B, T = 4, 8

    x = jax.random.normal(keys[0], (B, DIM), jnp.float32)
    text_feat = jax.random.normal(keys[1], (T, DIM), jnp.float32)

    def init(k, shp):
        return 0.02 * jax.random.normal(k, shp, jnp.float32)

    kv_w = init(keys[2], (2 * DIM, DIM))          # torch layout (out_features, in_features)
    params = dict(
        wq=init(keys[3], (DIM, DIM)).T,           # qq weight, no bias (qkv_bias=False)
        wk=kv_w[:DIM].T,                          # kv weight split: first DIM rows -> k
        wv=kv_w[DIM:].T,                          # last DIM rows -> v
        wproj=init(keys[4], (DIM, DIM)).T,
        bproj=init(keys[5], (1, DIM)),
        gamma=jnp.ones((1, DIM), jnp.float32),    # nn.LayerNorm default init
        beta=jnp.zeros((1, DIM), jnp.float32),
        w1=init(keys[6], (MLP_HIDDEN, DIM)).T,
        b1=init(keys[7], (1, MLP_HIDDEN)),
        w2=init(keys[8], (DIM, MLP_HIDDEN)).T,
        b2=init(keys[9], (1, DIM)),
    )

    # One-time parameter preparation: fold the attention scale into wq.
    kernel_params = dict(params)
    kernel_params["wq"] = params["wq"] * SCALE

    out = cross_attention_text_proj_block(x, text_feat, kernel_params)
    jax.block_until_ready(out)

    ref = _ref_forward(x, text_feat, params)
    assert out.shape == (B, DIM)
    assert jnp.allclose(out, ref, atol=2e-4, rtol=2e-4)
    print("KERNEL_OK")
</pallas_src>

<mosaic_0001>
module attributes {stable_mosaic.version = 11 : i64} {
  func.func @_block_kernel(%arg0: i32, %arg1: memref<4x32xf32, #tpu.memory_space<vmem>>, %arg2: memref<8x32xf32, #tpu.memory_space<vmem>>, %arg3: memref<32x32xf32, #tpu.memory_space<vmem>>, %arg4: memref<32x32xf32, #tpu.memory_space<vmem>>, %arg5: memref<32x32xf32, #tpu.memory_space<vmem>>, %arg6: memref<32x32xf32, #tpu.memory_space<vmem>>, %arg7: memref<1x32xf32, #tpu.memory_space<vmem>>, %arg8: memref<1x32xf32, #tpu.memory_space<vmem>>, %arg9: memref<1x32xf32, #tpu.memory_space<vmem>>, %arg10: memref<32x128xf32, #tpu.memory_space<vmem>>, %arg11: memref<1x128xf32, #tpu.memory_space<vmem>>, %arg12: memref<128x32xf32, #tpu.memory_space<vmem>>, %arg13: memref<1x32xf32, #tpu.memory_space<vmem>>, %arg14: memref<4x32xf32, #tpu.memory_space<vmem>>) attributes {dimension_semantics = [#tpu.dimension_semantics<parallel>], iteration_bounds = array<i64: 1>, scalar_prefetch = 0 : i64, scratch_operands = 0 : i64, tpu.core_type = #tpu.core_type<tc>, window_params = [{transform_indices = @transform_0, window_bounds = array<i64: 4, 32>}, {pipeline_mode = #tpu.pipeline_mode<synchronous>, transform_indices = @transform_1, window_bounds = array<i64: 8, 32>}, {pipeline_mode = #tpu.pipeline_mode<synchronous>, transform_indices = @transform_2, window_bounds = array<i64: 32, 32>}, {pipeline_mode = #tpu.pipeline_mode<synchronous>, transform_indices = @transform_3, window_bounds = array<i64: 32, 32>}, {pipeline_mode = #tpu.pipeline_mode<synchronous>, transform_indices = @transform_4, window_bounds = array<i64: 32, 32>}, {pipeline_mode = #tpu.pipeline_mode<synchronous>, transform_indices = @transform_5, window_bounds = array<i64: 32, 32>}, {pipeline_mode = #tpu.pipeline_mode<synchronous>, transform_indices = @transform_6, window_bounds = array<i64: 1, 32>}, {pipeline_mode = #tpu.pipeline_mode<synchronous>, transform_indices = @transform_7, window_bounds = array<i64: 1, 32>}, {pipeline_mode = #tpu.pipeline_mode<synchronous>, transform_indices = @transform_8, window_bounds = array<i64: 1, 32>}, {pipeline_mode = #tpu.pipeline_mode<synchronous>, transform_indices = @transform_9, window_bounds = array<i64: 32, 128>}, {pipeline_mode = #tpu.pipeline_mode<synchronous>, transform_indices = @transform_10, window_bounds = array<i64: 1, 128>}, {pipeline_mode = #tpu.pipeline_mode<synchronous>, transform_indices = @transform_11, window_bounds = array<i64: 128, 32>}, {pipeline_mode = #tpu.pipeline_mode<synchronous>, transform_indices = @transform_12, window_bounds = array<i64: 1, 32>}, {transform_indices = @transform_13, window_bounds = array<i64: 4, 32>}]} {
    %c0 = arith.constant 0 : index
    %c0_0 = arith.constant 0 : index
    %0 = vector.load %arg1[%c0, %c0_0] : memref<4x32xf32, #tpu.memory_space<vmem>>, vector<4x32xf32>
    %c0_1 = arith.constant 0 : index
    %c0_2 = arith.constant 0 : index
    %1 = vector.load %arg2[%c0_1, %c0_2] : memref<8x32xf32, #tpu.memory_space<vmem>>, vector<8x32xf32>
    %c0_3 = arith.constant 0 : index
    %c0_4 = arith.constant 0 : index
    %2 = vector.load %arg3[%c0_3, %c0_4] : memref<32x32xf32, #tpu.memory_space<vmem>>, vector<32x32xf32>
    %cst = arith.constant dense<0.000000e+00> : vector<4x32xf32>
    %3 = tpu.matmul %0, %2, %cst {dimension_numbers = #tpu.dot_dimension_numbers<[1], [0], [0], [1], [0, 0, 1, 1], [], []>} : vector<4x32xf32>, vector<32x32xf32>, vector<4x32xf32> -> vector<4x32xf32>
    %c0_5 = arith.constant 0 : index
    %c0_6 = arith.constant 0 : index
    %4 = vector.load %arg4[%c0_5, %c0_6] : memref<32x32xf32, #tpu.memory_space<vmem>>, vector<32x32xf32>
    %cst_7 = arith.constant dense<0.000000e+00> : vector<8x32xf32>
    %5 = tpu.matmul %1, %4, %cst_7 {dimension_numbers = #tpu.dot_dimension_numbers<[1], [0], [0], [1], [0, 0, 1, 1], [], []>} : vector<8x32xf32>, vector<32x32xf32>, vector<8x32xf32> -> vector<8x32xf32>
    %c0_8 = arith.constant 0 : index
    %c0_9 = arith.constant 0 : index
    %6 = vector.load %arg5[%c0_8, %c0_9] : memref<32x32xf32, #tpu.memory_space<vmem>>, vector<32x32xf32>
    %cst_10 = arith.constant dense<0.000000e+00> : vector<8x32xf32>
    %7 = tpu.matmul %1, %6, %cst_10 {dimension_numbers = #tpu.dot_dimension_numbers<[1], [0], [0], [1], [0, 0, 1, 1], [], []>} : vector<8x32xf32>, vector<32x32xf32>, vector<8x32xf32> -> vector<8x32xf32>
    %8 = tpu.iota {dimensions = array<i32: 0>} : vector<32x8xi32>
    %9 = tpu.iota {dimensions = array<i32: 1>} : vector<32x8xi32>
    %c4_i32 = arith.constant 4 : i32
    %10 = vector.broadcast %c4_i32 : i32 to vector<32x8xi32>
    %11 = arith.muli %9, %10 : vector<32x8xi32>
    %12 = arith.subi %8, %11 : vector<32x8xi32>
    %c0_i32 = arith.constant 0 : i32
    %13 = vector.broadcast %c0_i32 : i32 to vector<32x8xi32>
    %14 = arith.cmpi sge, %12, %13 : vector<32x8xi32>
    %c4_i32_11 = arith.constant 4 : i32
    %15 = vector.broadcast %c4_i32_11 : i32 to vector<32x8xi32>
    %16 = arith.cmpi slt, %12, %15 : vector<32x8xi32>
    %17 = arith.andi %14, %16 : vector<32x8xi1>
    %18 = arith.extui %17 : vector<32x8xi1> to vector<32x8xi32>
    %19 = arith.sitofp %18 : vector<32x8xi32> to vector<32x8xf32>
    %20 = tpu.iota {dimensions = array<i32: 1>} : vector<8x32xi32>
    %21 = tpu.iota {dimensions = array<i32: 0>} : vector<8x32xi32>
    %c4_i32_12 = arith.constant 4 : i32
    %22 = vector.broadcast %c4_i32_12 : i32 to vector<8x32xi32>
    %23 = arith.muli %21, %22 : vector<8x32xi32>
    %24 = arith.subi %20, %23 : vector<8x32xi32>
    %c0_i32_13 = arith.constant 0 : i32
    %25 = vector.broadcast %c0_i32_13 : i32 to vector<8x32xi32>
    %26 = arith.cmpi sge, %24, %25 : vector<8x32xi32>
    %c4_i32_14 = arith.constant 4 : i32
    %27 = vector.broadcast %c4_i32_14 : i32 to vector<8x32xi32>
    %28 = arith.cmpi slt, %24, %27 : vector<8x32xi32>
    %29 = arith.andi %26, %28 : vector<8x32xi1>
    %30 = arith.extui %29 : vector<8x32xi1> to vector<8x32xi32>
    %31 = arith.sitofp %30 : vector<8x32xi32> to vector<8x32xf32>
    %32 = vector.shape_cast %3 : vector<4x32xf32> to vector<4x1x32xf32>
    %33 = vector.shape_cast %5 : vector<8x32xf32> to vector<1x8x32xf32>
    %34 = vector.broadcast %32 : vector<4x1x32xf32> to vector<4x8x32xf32>
    %35 = vector.broadcast %33 : vector<1x8x32xf32> to vector<4x8x32xf32>
    %36 = arith.mulf %34, %35 : vector<4x8x32xf32>
    %37 = vector.shape_cast %36 : vector<4x8x32xf32> to vector<32x32xf32>
    %cst_15 = arith.constant dense<0.000000e+00> : vector<32x8xf32>
    %38 = tpu.matmul %37, %19, %cst_15 {dimension_numbers = #tpu.dot_dimension_numbers<[1], [0], [0], [1], [0, 0, 1, 1], [], []>} : vector<32x32xf32>, vector<32x8xf32>, vector<32x8xf32> -> vector<32x8xf32>
    %39 = vector.shape_cast %38 : vector<32x8xf32> to vector<4x8x8xf32>
    %cst_16 = arith.constant dense<0xFF800000> : vector<4x8xf32>
    %40 = vector.multi_reduction <maximumf>, %39, %cst_16 [1] : vector<4x8x8xf32> to vector<4x8xf32>
    %41 = vector.shape_cast %40 : vector<4x8xf32> to vector<4x1x8xf32>
    %42 = vector.broadcast %41 : vector<4x1x8xf32> to vector<4x8x8xf32>
    %43 = arith.subf %39, %42 : vector<4x8x8xf32>
    %44 = math.exp %43 : vector<4x8x8xf32>
    %cst_17 = arith.constant dense<0.000000e+00> : vector<4x8xf32>
    %45 = vector.multi_reduction <add>, %44, %cst_17 [1] : vector<4x8x8xf32> to vector<4x8xf32>
    %46 = vector.shape_cast %45 : vector<4x8xf32> to vector<4x1x8xf32>
    %47 = tpu.reciprocal %46 {approx = true} : vector<4x1x8xf32> -> vector<4x1x8xf32>
    %48 = vector.broadcast %47 : vector<4x1x8xf32> to vector<4x8x8xf32>
    %49 = arith.mulf %44, %48 : vector<4x8x8xf32>
    %50 = vector.shape_cast %49 : vector<4x8x8xf32> to vector<32x8xf32>
    %cst_18 = arith.constant dense<0.000000e+00> : vector<32x32xf32>
    %51 = tpu.matmul %50, %31, %cst_18 {dimension_numbers = #tpu.dot_dimension_numbers<[1], [0], [0], [1], [0, 0, 1, 1], [], []>} : vector<32x8xf32>, vector<8x32xf32>, vector<32x32xf32> -> vector<32x32xf32>
    %52 = vector.shape_cast %51 : vector<32x32xf32> to vector<4x8x32xf32>
    %53 = vector.shape_cast %7 : vector<8x32xf32> to vector<1x8x32xf32>
    %54 = vector.broadcast %53 : vector<1x8x32xf32> to vector<4x8x32xf32>
    %55 = arith.mulf %52, %54 : vector<4x8x32xf32>
    %cst_19 = arith.constant dense<0.000000e+00> : vector<4x32xf32>
    %56 = vector.multi_reduction <add>, %55, %cst_19 [1] : vector<4x8x32xf32> to vector<4x32xf32>
    %c0_20 = arith.constant 0 : index
    %c0_21 = arith.constant 0 : index
    %57 = vector.load %arg6[%c0_20, %c0_21] : memref<32x32xf32, #tpu.memory_space<vmem>>, vector<32x32xf32>
    %cst_22 = arith.constant dense<0.000000e+00> : vector<4x32xf32>
    %58 = tpu.matmul %56, %57, %cst_22 {dimension_numbers = #tpu.dot_dimension_numbers<[1], [0], [0], [1], [0, 0, 1, 1], [], []>} : vector<4x32xf32>, vector<32x32xf32>, vector<4x32xf32> -> vector<4x32xf32>
    %c0_23 = arith.constant 0 : index
    %c0_24 = arith.constant 0 : index
    %59 = vector.load %arg7[%c0_23, %c0_24] : memref<1x32xf32, #tpu.memory_space<vmem>>, vector<1x32xf32>
    %60 = vector.broadcast %59 : vector<1x32xf32> to vector<4x32xf32>
    %61 = arith.addf %58, %60 : vector<4x32xf32>
    %62 = arith.addf %0, %61 : vector<4x32xf32>
    %cst_25 = arith.constant dense<0.000000e+00> : vector<4xf32>
    %63 = vector.multi_reduction <add>, %62, %cst_25 [1] : vector<4x32xf32> to vector<4xf32>
    %64 = vector.shape_cast %63 : vector<4xf32> to vector<4x1xf32>
    %cst_26 = arith.constant 3.200000e+01 : f32
    %65 = vector.broadcast %cst_26 : f32 to vector<4x1xf32>
    %66 = arith.divf %64, %65 : vector<4x1xf32>
    %67 = vector.broadcast %66 : vector<4x1xf32> to vector<4x32xf32>
    %68 = arith.subf %62, %67 : vector<4x32xf32>
    %69 = arith.mulf %68, %68 : vector<4x32xf32>
    %cst_27 = arith.constant dense<0.000000e+00> : vector<4xf32>
    %70 = vector.multi_reduction <add>, %69, %cst_27 [1] : vector<4x32xf32> to vector<4xf32>
    %71 = vector.shape_cast %70 : vector<4xf32> to vector<4x1xf32>
    %cst_28 = arith.constant 3.200000e+01 : f32
    %72 = vector.broadcast %cst_28 : f32 to vector<4x1xf32>
    %73 = arith.divf %71, %72 : vector<4x1xf32>
    %74 = vector.broadcast %66 : vector<4x1xf32> to vector<4x32xf32>
    %75 = arith.subf %62, %74 : vector<4x32xf32>
    %cst_29 = arith.constant 9.99999974E-6 : f32
    %76 = vector.broadcast %cst_29 : f32 to vector<4x1xf32>
    %77 = arith.addf %73, %76 : vector<4x1xf32>
    %78 = math.rsqrt %77 : vector<4x1xf32>
    %79 = vector.broadcast %78 : vector<4x1xf32> to vector<4x32xf32>
    %80 = arith.mulf %75, %79 : vector<4x32xf32>
    %c0_30 = arith.constant 0 : index
    %c0_31 = arith.constant 0 : index
    %81 = vector.load %arg8[%c0_30, %c0_31] : memref<1x32xf32, #tpu.memory_space<vmem>>, vector<1x32xf32>
    %82 = vector.broadcast %81 : vector<1x32xf32> to vector<4x32xf32>
    %83 = arith.mulf %80, %82 : vector<4x32xf32>
    %c0_32 = arith.constant 0 : index
    %c0_33 = arith.constant 0 : index
    %84 = vector.load %arg9[%c0_32, %c0_33] : memref<1x32xf32, #tpu.memory_space<vmem>>, vector<1x32xf32>
    %85 = vector.broadcast %84 : vector<1x32xf32> to vector<4x32xf32>
    %86 = arith.addf %83, %85 : vector<4x32xf32>
    %c0_34 = arith.constant 0 : index
    %c0_35 = arith.constant 0 : index
    %87 = vector.load %arg10[%c0_34, %c0_35] : memref<32x128xf32, #tpu.memory_space<vmem>>, vector<32x128xf32>
    %cst_36 = arith.constant dense<0.000000e+00> : vector<4x128xf32>
    %88 = tpu.matmul %86, %87, %cst_36 {dimension_numbers = #tpu.dot_dimension_numbers<[1], [0], [0], [1], [0, 0, 1, 1], [], []>} : vector<4x32xf32>, vector<32x128xf32>, vector<4x128xf32> -> vector<4x128xf32>
    %c0_37 = arith.constant 0 : index
    %c0_38 = arith.constant 0 : index
    %89 = vector.load %arg11[%c0_37, %c0_38] : memref<1x128xf32, #tpu.memory_space<vmem>>, vector<1x128xf32>
    %90 = vector.broadcast %89 : vector<1x128xf32> to vector<4x128xf32>
    %91 = arith.addf %88, %90 : vector<4x128xf32>
    %cst_39 = arith.constant 5.000000e-01 : f32
    %92 = vector.broadcast %cst_39 : f32 to vector<4x128xf32>
    %93 = arith.mulf %92, %91 : vector<4x128xf32>
    %cst_40 = arith.constant 0.707106769 : f32
    %94 = vector.broadcast %cst_40 : f32 to vector<4x128xf32>
    %95 = arith.mulf %91, %94 : vector<4x128xf32>
    %96 = math.erf %95 : vector<4x128xf32>
    %cst_41 = arith.constant 1.000000e+00 : f32
    %97 = vector.broadcast %cst_41 : f32 to vector<4x128xf32>
    %98 = arith.addf %97, %96 : vector<4x128xf32>
    %99 = arith.mulf %93, %98 : vector<4x128xf32>
    %c0_42 = arith.constant 0 : index
    %c0_43 = arith.constant 0 : index
    %100 = vector.load %arg12[%c0_42, %c0_43] : memref<128x32xf32, #tpu.memory_space<vmem>>, vector<128x32xf32>
    %cst_44 = arith.constant dense<0.000000e+00> : vector<4x32xf32>
    %101 = tpu.matmul %99, %100, %cst_44 {dimension_numbers = #tpu.dot_dimension_numbers<[1], [0], [0], [1], [0, 0, 1, 1], [], []>} : vector<4x128xf32>, vector<128x32xf32>, vector<4x32xf32> -> vector<4x32xf32>
    %c0_45 = arith.constant 0 : index
    %c0_46 = arith.constant 0 : index
    %102 = vector.load %arg13[%c0_45, %c0_46] : memref<1x32xf32, #tpu.memory_space<vmem>>, vector<1x32xf32>
    %103 = vector.broadcast %102 : vector<1x32xf32> to vector<4x32xf32>
    %104 = arith.addf %101, %103 : vector<4x32xf32>
    %105 = arith.addf %62, %104 : vector<4x32xf32>
    %c0_47 = arith.constant 0 : index
    %c0_48 = arith.constant 0 : index
    %106 = vector.load %arg14[%c0_47, %c0_48] : memref<4x32xf32, #tpu.memory_space<vmem>>, vector<4x32xf32>
    tpu.vector_store %arg14[%c0_47, %c0_48], %105 {strides = array<i32>} : memref<4x32xf32, #tpu.memory_space<vmem>>, vector<4x32xf32>,
    return
  }
  func.func @transform_0(%arg0: i32) -> (i32, i32) {
    %c0_i32 = arith.constant 0 : i32
    %c0_i32_0 = arith.constant 0 : i32
    return %arg0, %c0_i32 : i32, i32
  }
  func.func @transform_1(%arg0: i32) -> (i32, i32) {
    %c0_i32 = arith.constant 0 : i32
    %c0_i32_0 = arith.constant 0 : i32
    %c0_i32_1 = arith.constant 0 : i32
    return %c0_i32, %c0_i32_0 : i32, i32
  }
  func.func @transform_2(%arg0: i32) -> (i32, i32) {
    %c0_i32 = arith.constant 0 : i32
    %c0_i32_0 = arith.constant 0 : i32
    %c0_i32_1 = arith.constant 0 : i32
    return %c0_i32, %c0_i32_0 : i32, i32
  }
  func.func @transform_3(%arg0: i32) -> (i32, i32) {
    %c0_i32 = arith.constant 0 : i32
    %c0_i32_0 = arith.constant 0 : i32
    %c0_i32_1 = arith.constant 0 : i32
    return %c0_i32, %c0_i32_0 : i32, i32
  }
  func.func @transform_4(%arg0: i32) -> (i32, i32) {
    %c0_i32 = arith.constant 0 : i32
    %c0_i32_0 = arith.constant 0 : i32
    %c0_i32_1 = arith.constant 0 : i32
    return %c0_i32, %c0_i32_0 : i32, i32
  }
  func.func @transform_5(%arg0: i32) -> (i32, i32) {
    %c0_i32 = arith.constant 0 : i32
    %c0_i32_0 = arith.constant 0 : i32
    %c0_i32_1 = arith.constant 0 : i32
    return %c0_i32, %c0_i32_0 : i32, i32
  }
  func.func @transform_6(%arg0: i32) -> (i32, i32) {
    %c0_i32 = arith.constant 0 : i32
    %c0_i32_0 = arith.constant 0 : i32
    %c0_i32_1 = arith.constant 0 : i32
    return %c0_i32, %c0_i32_0 : i32, i32
  }
  func.func @transform_7(%arg0: i32) -> (i32, i32) {
    %c0_i32 = arith.constant 0 : i32
    %c0_i32_0 = arith.constant 0 : i32
    %c0_i32_1 = arith.constant 0 : i32
    return %c0_i32, %c0_i32_0 : i32, i32
  }
  func.func @transform_8(%arg0: i32) -> (i32, i32) {
    %c0_i32 = arith.constant 0 : i32
    %c0_i32_0 = arith.constant 0 : i32
    %c0_i32_1 = arith.constant 0 : i32
    return %c0_i32, %c0_i32_0 : i32, i32
  }
  func.func @transform_9(%arg0: i32) -> (i32, i32) {
    %c0_i32 = arith.constant 0 : i32
    %c0_i32_0 = arith.constant 0 : i32
    %c0_i32_1 = arith.constant 0 : i32
    return %c0_i32, %c0_i32_0 : i32, i32
  }
  func.func @transform_10(%arg0: i32) -> (i32, i32) {
    %c0_i32 = arith.constant 0 : i32
    %c0_i32_0 = arith.constant 0 : i32
    %c0_i32_1 = arith.constant 0 : i32
    return %c0_i32, %c0_i32_0 : i32, i32
  }
  func.func @transform_11(%arg0: i32) -> (i32, i32) {
    %c0_i32 = arith.constant 0 : i32
    %c0_i32_0 = arith.constant 0 : i32
    %c0_i32_1 = arith.constant 0 : i32
    return %c0_i32, %c0_i32_0 : i32, i32
  }
  func.func @transform_12(%arg0: i32) -> (i32, i32) {
    %c0_i32 = arith.constant 0 : i32
    %c0_i32_0 = arith.constant 0 : i32
    %c0_i32_1 = arith.constant 0 : i32
    return %c0_i32, %c0_i32_0 : i32, i32
  }
  func.func @transform_13(%arg0: i32) -> (i32, i32) {
    %c0_i32 = arith.constant 0 : i32
    %c0_i32_0 = arith.constant 0 : i32
    return %arg0, %c0_i32 : i32, i32
  }
}

</mosaic_0001>

<bundles_post_ra>
// kernel: tpu_custom_call.1
= control target key start
LH: loop header
LB: loop body
LE: loop exit
PB: predicated region body
PF: predicated region fallthrough
CT: control target
= control target key end

     0   :  { %18 = vsyncpa [#allocation3], 0  ;;  %s1696_s0 = inlined_call_operand.hbm [shape: f32[4,32], index: 0, kind: input, shape index: {}]   ;;  %s1697_s1 = inlined_call_operand.hbm [shape: f32[8,32], index: 1, kind: input, shape index: {}]   ;;  %s1698_s2 = inlined_call_operand.vmem [shape: f32[32,32], index: 2, kind: input, shape index: {}]   ;;  %s1699_s3 = inlined_call_operand.vmem [shape: f32[32,32], index: 3, kind: input, shape index: {}]   ;;  %s1700_s4 = inlined_call_operand.vmem [shape: f32[32,32], index: 4, kind: input, shape index: {}]   ;;  %s1701_s5 = inlined_call_operand.vmem [shape: f32[32,32], index: 5, kind: input, shape index: {}]   ;;  %s1702_s6 = inlined_call_operand.vmem [shape: f32[1,32], index: 6, kind: input, shape index: {}]   ;;  %s1703_s7 = inlined_call_operand.vmem [shape: f32[1,32], index: 7, kind: input, shape index: {}]   ;;  %s1704_s8 = inlined_call_operand.vmem [shape: f32[1,32], index: 8, kind: input, shape index: {}]   ;;  %s1705_s9 = inlined_call_operand.vmem [shape: f32[32,128], index: 9, kind: input, shape index: {}]   ;;  %s1706_s10 = inlined_call_operand.vmem [shape: f32[1,128], index: 10, kind: input, shape index: {}]   ;;  %s1707_s11 = inlined_call_operand.vmem [shape: f32[128,32], index: 11, kind: input, shape index: {}]   ;;  %s1708_s12 = inlined_call_operand.vmem [shape: f32[1,32], index: 12, kind: input, shape index: {}]   ;;  %s1709_s13 = inlined_call_operand.hbm [shape: f32[4,32], index: 13, kind: output, shape index: {}]  }
   0x1   :  { %19 = vsyncpa [#allocation6], 0 }
   0x2   :  { %20 = vsyncpa [#allocation4], 0  ;;  %s1374_s25 = smov [#allocation2]   ;;  %s1375_s27 = smov [#allocation5]  }
   0x3   :  { %s27_s26 = sshll.u32 %s1374_s25, 4  ;;  %s37_s28 = sshll.u32 %s1375_s27, 4  ;;  %s28_s26 = int_to_ptr.vmem [resolvable:$true] %s27_s26  ;;  %s38_s28 = int_to_ptr.vmem [resolvable:$true] %s37_s28 }
   0x4   :  { %s1302_s14 = scalar_lea.hbm %s1696_s0, 64 }
   0x5   :  { %p1303_p0 = scmp.ne.s32.totalorder %s1696_s0, %s1302_s14  ;;  %p1306_p1 = scmp.lt.u32.totalorder %s1302_s14, %s1696_s0 }
   0x7   :  { %p1308_p2 = pnand %p1306_p1, %p1303_p0 }
   0x9   :  { %1311 = shalt.err (!%p1308_p2)
}
   0xa   :  { %s1312_s19 = scalar_lea.vmem %s28_s26, 64  ;;  %p1317_p4 = scmp.lt.s32.totalorder %s28_s26, %s28_s26 }
   0xb   :  { %p1313_p3 = scmp.ne.s32.totalorder %s28_s26, %s1312_s19  ;;  %p1318_p5 = scmp.lt.s32.totalorder %s1312_s19, %s1312_s19 }
   0xd   :  { %p1319_p6 = por %p1318_p5, %p1317_p4 }
   0xf   :  { %p1320_p7 = pnand %p1319_p6, %p1313_p3 }
  0x11   :  { %1323 = shalt.err (!%p1320_p7)
}
  0x12   :  { %30 = dma.hbm_to_vmem [thread:$0]  %s1696_s0, 64, %s28_s26, [#allocation3]  }
  0x13   :  { %s1324_s24 = scalar_lea.hbm %s1697_s1, 128 }
  0x14   :  { %p1325_p8 = scmp.ne.s32.totalorder %s1697_s1, %s1324_s24  ;;  %p1328_p9 = scmp.lt.u32.totalorder %s1324_s24, %s1697_s1 }
  0x16   :  { %p1330_p10 = pnand %p1328_p9, %p1325_p8 }
  0x18   :  { %1333 = shalt.err (!%p1330_p10)
}
  0x19   :  { %s1334_s14 = scalar_lea.vmem %s38_s28, 128  ;;  %p1339_p12 = scmp.lt.s32.totalorder %s38_s28, %s38_s28 }
  0x1a   :  { %p1335_p11 = scmp.ne.s32.totalorder %s38_s28, %s1334_s14  ;;  %p1340_p13 = scmp.lt.s32.totalorder %s1334_s14, %s1334_s14 }
  0x1c   :  { %p1341_p0 = por %p1340_p13, %p1339_p12 }
  0x1e   :  { %p1342_p1 = pnand %p1341_p0, %p1335_p11 }
  0x20   :  { %1345 = shalt.err (!%p1342_p1)
}
  0x21   :  { %40 = dma.hbm_to_vmem [thread:$0]  %s1697_s1, 128, %s38_s28, [#allocation6]  }
  0x22   :  { %1368 = dma.done.wait [#allocation3], 64  }
  0x23   :  { %1369 = vsyncadd [#allocation3], 4294967232 }
  0x24   :  { %1370 = dma.done.wait [#allocation6], 128  }
  0x25   :  { %1371 = vsyncadd [#allocation6], 4294967168  ;;  %v1376_v0 = vmov 0.0|0.0   ;;  %vm1377_vm0 = vmmov 0   ;;  %v1378_v1 = vmov 0.0   ;;  %v71_v2 = vld [vmem:[%s1698_s2] sm:$0xff]  ;;  %v300_v16 = vlaneseq }
  0x26   :  { %1211 = vmatprep.subr.bf16.mxu0 %v1376_v0  ;;  %1107 = vmatprep.mubr.msk.f32.mxu0 %vm1377_vm0, %v1378_v1  ;;  %v72_v3 = vld [vmem:[%s1698_s2 + $0x8] sm:$0xff]  ;;  %v73_v4 = vld [vmem:[%s1698_s2 + $0x10] sm:$0xff]  ;;  %v74_v6 = vld [vmem:[%s1698_s2 + $0x18] sm:$0xff]  ;;  %vm75_vm1 = vcmask 261120   ;;  %v1379_v27 = vmov 1.0|1.0  }
  0x27   :  { %v1212_v5 = vpack.c.bf16 %v72_v3, %v71_v2  ;;  %v1215_v7 = vpack.c.bf16 %v74_v6, %v73_v4  ;;  %v149_v8 = vld [vmem:[%s1699_s3] sm:$0xff]  ;;  %v150_v9 = vld [vmem:[%s1699_s3 + $0x8] sm:$0xff]  ;;  %v151_v12 = vld [vmem:[%s1699_s3 + $0x10] sm:$0xff]  ;;  %v1520_v17 = vshrl.u32 %v300_v16, 7  ;;  %v1522_v18 = vand.u32 127, %v300_v16 }
  0x28   :  { %v1499_v10 = vld [vmem:[#allocation2] sm:$0xf]  ;;  %v1218_v11 = vpack.c.bf16 %v150_v9, %v149_v8  ;;  %v152_v13 = vld [vmem:[%s1699_s3 + $0x18] sm:$0xff]  ;;  %v1513_v15 = vld [vmem:[#allocation5] sm:$0xff]  ;;  %v1380_v28 = vmov 1966171168  }
  0x29   :  { %1213 = vmatpush3.bf16.msra.mxu0 %v1212_v5  ;;  %v1221_v14 = vpack.c.bf16 %v152_v13, %v151_v12  ;;  %v302_v19 = vadd.s32 8, %v1520_v17  ;;  %v307_v20 = vmul.u32 4, %v1522_v18  ;;  %v303_v23 = vadd.s32 16, %v1520_v17  ;;  %v226_v51 = vld [vmem:[%s1700_s4] sm:$0xff]  ;;  %v227_v52 = vld [vmem:[%s1700_s4 + $0x8] sm:$0xff]  ;;  %v228_v54 = vld [vmem:[%s1700_s4 + $0x10] sm:$0xff] }
  0x2a   :  { %1214 = vmatprep.subr.bf16.mxu0 %v1376_v0  ;;  %v304_v24 = vadd.s32 24, %v1520_v17  ;;  %v341_v29 = vunpack.c.l.s4 %v1380_v28  ;;  %v366_v34 = vsub.s32 0, %v1520_v17  ;;  %v1224_v53 = vpack.c.bf16 %v227_v52, %v226_v51  ;;  %v229_v55 = vld [vmem:[%s1700_s4 + $0x18] sm:$0xff] }
  0x2b   :  { %v308_v21 = vsub.s32 %v1520_v17, %v307_v20  ;;  %v309_v22 = vsub.s32 %v302_v19, %v307_v20  ;;  %v310_v25 = vsub.s32 %v303_v23, %v307_v20  ;;  %v332_v56 = vmul.u32 4, %v1520_v17 }
  0x2c   :  { %v311_v26 = vsub.s32 %v304_v24, %v307_v20  ;;  %v342_v30 = vunpack.c.0.s8 %v341_v29  ;;  %v1227_v57 = vpack.c.bf16 %v229_v55, %v228_v54  ;;  %v1381_v59 = vmov 1.0  }
  0x2d   :  { %1216 = vmatpush3.bf16.msra.mxu0 %v1215_v7  ;;  %vm312_vm2 = vcmp.ge.s32.totalorder %v308_v21, 0  ;;  %vm313_vm3 = vcmp.ge.s32.totalorder %v309_v22, 0  ;;  %vm316_vm4 = vcmp.lt.s32.totalorder %v308_v21, 4  ;;  %vm317_vm5 = vcmp.lt.s32.totalorder %v309_v22, 4 }
  0x2e   :  { %1217 = vmatprep.subr.bf16.mxu0 %v1376_v0  ;;  %vm320_vm6 = vmand %vm312_vm2, %vm316_vm4  ;;  %vm314_vm9 = vcmp.ge.s32.totalorder %v310_v25, 0  ;;  %vm315_vm10 = vcmp.ge.s32.totalorder %v311_v26, 0  ;;  %vm318_vm11 = vcmp.lt.s32.totalorder %v310_v25, 4  ;;  %vm319_vm12 = vcmp.lt.s32.totalorder %v311_v26, 4 }
  0x2f   :  { %vm321_vm7 = vmand %vm313_vm3, %vm317_vm5  ;;  %v345_v31 = vsub.s32 %v342_v30, %v1520_v17  ;;  %v333_v58 = vsub.s32 %v1522_v18, %v332_v56  ;;  %vm485_vm5 = vcmask 64512  }
  0x30   :  { %1108 = vmatmul.mubr.msk.f32.vlgmr.msra.gmra.mrb[0].mxu0 %vm75_vm1, %v1499_v10  ;;  %vm1229_vm8 = vmpackc.low %vm321_vm7, %vm320_vm6  ;;  %vm706_vm6 = vcmask 1041409   ;;  %vm708_vm7 = vcmask 1042434  }
  0x31   :  { %1219 = vmatpush3.bf16.msra.mxu0 %v1218_v11  ;;  %1118 = vmatprep.mubr.msk.f32.mxu0 %vm1377_vm0, %v1378_v1  ;;  %vm322_vm13 = vmand %vm314_vm9, %vm318_vm11  ;;  %vm334_vm2 = vcmp.ge.s32.totalorder %v333_v58, 0  ;;  %vm335_vm3 = vcmp.lt.s32.totalorder %v333_v58, 4  ;;  %vm785_vm9 = vcmask 257024  }
  0x32   :  { %1220 = vmatprep.subr.bf16.mxu0 %v1376_v0  ;;  %1230 = vmatprep.subr.msk.bf16.mxu1 %vm1229_vm8, %v1379_v27  ;;  %vm323_vm14 = vmand %vm315_vm10, %vm319_vm12 }
  0x33   :  { %1232 = vmatpush3.bf16.msk.msra.mxu1 %vm1229_vm8, %v1379_v27  ;;  %vm1233_vm15 = vmpackc.low %vm323_vm14, %vm322_vm13  ;;  %vm710_vm8 = vcmask 1043459  }
  0x34   :  { %1234 = vmatprep.subr.msk.bf16.mxu1 %vm1233_vm15, %v1379_v27  ;;  %vm336_vm4 = vmand %vm334_vm2, %vm335_vm3 }
  0x35   :  { %1222 = vmatpush3.bf16.msra.mxu0 %v1221_v14 }
  0x36   :  { %1223 = vmatprep.subr.bf16.mxu0 %v1376_v0 }
  0x37   :  { %1236 = vmatpush3.bf16.msk.msra.mxu1 %vm1233_vm15, %v1379_v27 }
  0x38   :  { %1119 = vmatmul.mubr.msk.f32.vlgmr.msra.gmra.mrb[2].mxu0 %vm75_vm1, %v1513_v15  ;;  %1249 = vmatprep.subr.bf16.mxu1 %v1376_v0 }
  0x39   :  { %1129 = vmatprep.mubr.msk.f32.mxu0 %vm1377_vm0, %v1378_v1  ;;  %1225 = vmatpush3.bf16.msra.mxu0 %v1224_v53 }
  0x3a   :  { %1226 = vmatprep.subr.bf16.mxu0 %v1376_v0 }
  0x3d   :  { %1228 = vmatpush3.bf16.msra.mxu0 %v1227_v57 }
  0x3e   :  { %1146 = vmatprep.subr.msk.mxu0 %vm336_vm4, %v1381_v59 }
  0x40   :  { %1130 = vmatmul.mubr.msk.f32.vlgmr.msra.gmra.mrb[4].mxu0 %vm75_vm1, %v1513_v15 }
  0x41   :  { %1147 = vmatpush3.msk.msra.mxu0 %vm336_vm4, %v1381_v59 }
  0x42   :  { %1237 = vmatprep.subr.bf16.mxu0 %v1376_v0 }
 0x103   :  { %v145_v32 = vpop.f32.mrb[0].mxu0 }
 0x104   :  { %v346_v33 = vrot.slane %v145_v32, %v345_v31  ;;  %v1109_v35 = vpop.f32.mrb[1].mxu0 }
 0x106   :  { %v347_v36 = vcombine.high %v346_v33, %v346_v33  ;;  %v354_v37 = vrot.slane %v346_v33, %v345_v31 }
 0x108   :  { %v361_v38 = vrot.slane %v347_v36, %v345_v31  ;;  %v362_v39 = vcombine.high %v354_v37, %v354_v37  ;;  %v367_v40 = vrot.slane %v354_v37, %v366_v34 }
 0x10a   :  { %v363_v41 = vcombine.high %v361_v38, %v361_v38  ;;  %v371_v42 = vrot.slane %v361_v38, %v366_v34  ;;  %v375_v43 = vrot.slane %v362_v39, %v366_v34 }
 0x10b   :  { %v222_v44 = vpop.f32.mrb[2].mxu0 }
 0x10c   :  { %v379_v45 = vrot.slane %v363_v41, %v366_v34  ;;  %v385_v46 = vmul.f32 %v371_v42, %v222_v44  ;;  %v386_v47 = vmul.f32 %v375_v43, %v222_v44  ;;  %v1120_v48 = vpop.f32.mrb[3].mxu0  ;;  %v384_v49 = vmul.f32 %v367_v40, %v222_v44 }
 0x10e   :  { %v387_v50 = vmul.f32 %v379_v45, %v222_v44  ;;  %1140 = vmatprep.mubr.msk.f32.mxu1 %vm75_vm1, %v384_v49 }
 0x10f   :  { %1141 = vmatmul.mubr.msk.f32.vlgmr.msra.gmra.mrb[0].mxu1 %vm75_vm1, %v385_v46 }
 0x110   :  { %1143 = vmatprep.mubr.msk.f32.mxu1 %vm75_vm1, %v386_v47 }
 0x113   :  { %1144 = vmatmul.mubr.msk.f32.gmra.mrb[2].mxu1 %vm75_vm1, %v387_v50 }
 0x114   :  { %1208 = vmatprep.mubr.msk.f32.mxu1 %vm1377_vm0, %v1378_v1 }
 0x1e2   :  { %v1142_v60 = vpop.f32.mrb[0].mxu1 }
 0x1e3   :  { %v493_v61 = vsel %vm485_vm5, %v1142_v60, -inf  ;;  %v466_v62 = vpop.f32.mrb[1].mxu1 }
 0x1e4   :  { %v494_v63 = vrot.slane %v493_v61, 4  ;;  %v486_v2 = vsel %vm485_vm5, %v466_v62, -inf }
 0x1e5   :  { %v487_v3 = vrot.slane %v486_v2, 4 }
 0x1e6   :  { %v495_v4 = vmax.f32 %v493_v61, %v494_v63  ;;  %v1145_v5 = vpop.f32.mrb[2].mxu1 }
 0x1e7   :  { %v488_v6 = vmax.f32 %v486_v2, %v487_v3  ;;  %v507_v7 = vsel %vm485_vm5, %v1145_v5, -inf  ;;  %v476_v8 = vpop.f32.mrb[3].mxu1 }
 0x1e8   :  { %v496_v9 = vrot.slane %v495_v4, 2  ;;  %v508_v11 = vrot.slane %v507_v7, 4  ;;  %v500_v12 = vsel %vm485_vm5, %v476_v8, -inf }
 0x1e9   :  { %v489_v13 = vrot.slane %v488_v6, 2  ;;  %v501_v14 = vrot.slane %v500_v12, 4 }
 0x1ea   :  { %v497_v15 = vmax.f32 %v495_v4, %v496_v9  ;;  %v509_v16 = vmax.f32 %v507_v7, %v508_v11 }
 0x1eb   :  { %v490_v17 = vmax.f32 %v488_v6, %v489_v13  ;;  %v502_v18 = vmax.f32 %v500_v12, %v501_v14 }
 0x1ec   :  { %v498_v19 = vrot.slane %v497_v15, 1  ;;  %v510_v20 = vrot.slane %v509_v16, 2 }
 0x1ed   :  { %v491_v21 = vrot.slane %v490_v17, 1  ;;  %v503_v22 = vrot.slane %v502_v18, 2 }
 0x1ee   :  { %v499_v23 = vmax.f32 %v497_v15, %v498_v19  ;;  %v511_v24 = vmax.f32 %v509_v16, %v510_v20  ;;  %v691_v20 = vld [vmem:[%s1701_s5] sm:$0xff] }
 0x1ef   :  { %v492_v25 = vmax.f32 %v490_v17, %v491_v21  ;;  %v504_v26 = vmax.f32 %v502_v18, %v503_v22  ;;  %v296_v18 = vpop.f32.mrb[4].mxu0  ;;  %v692_v21 = vld [vmem:[%s1701_s5 + $0x8] sm:$0xff] }
 0x1f0   :  { %v515_v27 = vsub.f32 %v1142_v60, %v499_v23  ;;  %v512_v28 = vrot.slane %v511_v24, 1  ;;  %v1131_v19 = vpop.f32.mrb[5].mxu0  ;;  %v1238_v22 = vpack.c.bf16 %v692_v21, %v691_v20  ;;  %v693_v23 = vld [vmem:[%s1701_s5 + $0x10] sm:$0xff]  ;;  %v906_v20 = vld [vmem:[%s1707_s11 + $0x8] sm:$0xff] }
 0x1f1   :  { %v514_v29 = vsub.f32 %v466_v62, %v492_v25  ;;  %v505_v30 = vrot.slane %v504_v26, 1  ;;  %v905_v19 = vld [vmem:[%s1707_s11] sm:$0xff]  ;;  %v907_v21 = vld [vmem:[%s1707_s11 + $0x10] sm:$0xff] }
 0x1f2   :  { %v520_v31 = vmul.f32 1.442695, %v515_v27  ;;  %v513_v32 = vmax.f32 %v511_v24, %v512_v28  ;;  %v694_v24 = vld [vmem:[%s1701_s5 + $0x18] sm:$0xff] }
 0x1f3   :  { %v518_v33 = vmul.f32 1.442695, %v514_v29  ;;  %v506_v34 = vmax.f32 %v504_v26, %v505_v30  ;;  %v1241_v25 = vpack.c.bf16 %v694_v24, %v693_v23  ;;  %v908_v23 = vld [vmem:[%s1707_s11 + $0x18] sm:$0xff] }
 0x1f4   :  { %1282 = vpow2.f32 %v520_v31  ;;  %v517_v35 = vsub.f32 %v1145_v5, %v513_v32  ;;  %v1253_v24 = vpack.c.bf16 %v908_v23, %v907_v21 }
 0x1f5   :  { %1284 = vpow2.f32 %v518_v33  ;;  %v516_v36 = vsub.f32 %v476_v8, %v506_v34 }
 0x1f6   :  { %v524_v37 = vmul.f32 1.442695, %v517_v35 }
 0x1f7   :  { %v522_v38 = vmul.f32 1.442695, %v516_v36 }
 0x1f8   :  { %1286 = vpow2.f32 %v524_v37 }
 0x1f9   :  { %1288 = vpow2.f32 %v522_v38 }
 0x1fe   :  { %v1283_v39 = vpop.eup %1282 }
 0x1ff   :  { %v1285_v40 = vpop.eup %1284  ;;  %v533_v41 = vsel %vm485_vm5, %v1283_v39, 0.0 }
 0x200   :  { %v534_v42 = vrot.slane %v533_v41, 4  ;;  %v526_v43 = vsel %vm485_vm5, %v1285_v40, 0.0 }
 0x201   :  { %v527_v44 = vrot.slane %v526_v43, 4 }
 0x202   :  { %v1287_v45 = vpop.eup %1286  ;;  %v535_v46 = vadd.f32 %v534_v42, %v533_v41 }
 0x203   :  { %v1289_v47 = vpop.eup %1288  ;;  %v528_v48 = vadd.f32 %v527_v44, %v526_v43  ;;  %v547_v49 = vsel %vm485_vm5, %v1287_v45, 0.0 }
 0x204   :  { %v536_v50 = vrot.slane %v535_v46, 2  ;;  %v548_v51 = vrot.slane %v547_v49, 4  ;;  %v540_v52 = vsel %vm485_vm5, %v1289_v47, 0.0 }
 0x205   :  { %v529_v53 = vrot.slane %v528_v48, 2  ;;  %v541_v54 = vrot.slane %v540_v52, 4 }
 0x206   :  { %v537_v55 = vadd.f32 %v536_v50, %v535_v46  ;;  %v549_v56 = vadd.f32 %v548_v51, %v547_v49 }
 0x207   :  { %v530_v57 = vadd.f32 %v529_v53, %v528_v48  ;;  %v542_v58 = vadd.f32 %v541_v54, %v540_v52 }
 0x208   :  { %v538_v59 = vrot.slane %v537_v55, 1  ;;  %v550_v60 = vrot.slane %v549_v56, 2 }
 0x209   :  { %v531_v61 = vrot.slane %v530_v57, 1  ;;  %v543_v62 = vrot.slane %v542_v58, 2 }
 0x20a   :  { %v539_v63 = vadd.f32 %v538_v59, %v537_v55  ;;  %v551_v2 = vadd.f32 %v550_v60, %v549_v56 }
 0x20b   :  { %v532_v3 = vadd.f32 %v531_v61, %v530_v57  ;;  %v544_v4 = vadd.f32 %v543_v62, %v542_v58 }
 0x20c   :  { %1290 = vrcp.f32 %v539_v63  ;;  %v552_v5 = vrot.slane %v551_v2, 1 }
 0x20d   :  { %v545_v6 = vrot.slane %v544_v4, 1  ;;  %1292 = vrcp.f32 %v532_v3  ;;  %v1037_v3 = vld [vmem:[%s1702_s6] ss:$0 sm:$0xff] }
 0x20e   :  { %v553_v7 = vadd.f32 %v552_v5, %v551_v2 }
 0x20f   :  { %v546_v8 = vadd.f32 %v545_v6, %v544_v4 }
 0x210   :  { %1294 = vrcp.f32 %v553_v7 }
 0x211   :  { %1296 = vrcp.f32 %v546_v8 }
 0x216   :  { %v1291_v9 = vpop.eup %1290 }
 0x217   :  { %v1293_v11 = vpop.eup %1292  ;;  %v559_v13 = vmul.f32 %v1291_v9, %v1283_v39 }
 0x218   :  { %v558_v12 = vmul.f32 %v1293_v11, %v1285_v40 }
 0x21a   :  { %v1295_v14 = vpop.eup %1294  ;;  %1148 = vmatprep.mubr.msk.f32.mxu0 %vm485_vm5, %v558_v12 }
 0x21b   :  { %v1297_v15 = vpop.eup %1296  ;;  %1149 = vmatmul.mubr.msk.f32.vlgmr.msra.gmra.mrb[6].mxu0 %vm485_vm5, %v559_v13  ;;  %v561_v17 = vmul.f32 %v1295_v14, %v1287_v45  ;;  %v816_v14 = vld [vmem:[%s1705_s9] sm:$0xff] }
 0x21c   :  { %v560_v16 = vmul.f32 %v1297_v15, %v1289_v47  ;;  %1239 = vmatpush3.bf16.msra.mxu0 %v1238_v22  ;;  %v1250_v22 = vpack.c.bf16 %v906_v20, %v905_v19 }
 0x21d   :  { %1240 = vmatprep.subr.bf16.mxu0 %v1376_v0 }
 0x21e   :  { %1151 = vmatprep.mubr.msk.f32.mxu0 %vm485_vm5, %v560_v16  ;;  %v818_v16 = vld [vmem:[%s1705_s9 + $0x10] sm:$0xff]  ;;  %1251 = vmatpush3.bf16.msra.mxu1 %v1250_v22 }
 0x21f   :  { %1152 = vmatmul.mubr.msk.f32.gmra.mrb[8].mxu0 %vm485_vm5, %v561_v17  ;;  %v819_v17 = vld [vmem:[%s1705_s9 + $0x18] sm:$0xff]  ;;  %1252 = vmatprep.subr.bf16.mxu1 %v1376_v0 }
 0x220   :  { %1162 = vmatprep.mubr.msk.f32.mxu0 %vm1377_vm0, %v1378_v1  ;;  %1242 = vmatpush3.bf16.msra.mxu0 %v1241_v25  ;;  %v909_v25 = vld [vmem:[%s1707_s11 + $0x20] sm:$0xff] }
 0x221   :  { %1243 = vmatprep.subr.bf16.mxu0 %v1376_v0 }
 0x222   :  { %1254 = vmatpush3.bf16.msra.mxu1 %v1253_v24 }
 0x223   :  { %1255 = vmatprep.subr.bf16.mxu1 %v1376_v0 }
 0x2ee   :  { %v1150_v26 = vpop.f32.mrb[6].mxu0 }
 0x2ef   :  { %v660_v27 = vmul.f32 %v1150_v26, %v296_v18  ;;  %v640_v28 = vpop.f32.mrb[7].mxu0  ;;  %v910_v26 = vld [vmem:[%s1707_s11 + $0x28] sm:$0xff] }
 0x2f0   :  { %v659_v29 = vmul.f32 %v640_v28, %v296_v18 }
 0x2f1   :  { %v670_v30 = vsel %vm75_vm1, %v660_v27, 0.0  ;;  %v1256_v27 = vpack.c.bf16 %v910_v26, %v909_v25 }
 0x2f2   :  { %v671_v31 = vrot.slane %v670_v30, 4  ;;  %v663_v32 = vsel %vm75_vm1, %v659_v29, 0.0  ;;  %v1153_v33 = vpop.f32.mrb[8].mxu0 }
 0x2f3   :  { %v664_v34 = vrot.slane %v663_v32, 4  ;;  %v662_v35 = vmul.f32 %v1153_v33, %v296_v18  ;;  %v650_v36 = vpop.f32.mrb[9].mxu0  ;;  %1257 = vmatpush3.bf16.msra.mxu1 %v1256_v27 }
 0x2f4   :  { %v672_v37 = vadd.f32 %v671_v31, %v670_v30  ;;  %v661_v38 = vmul.f32 %v650_v36, %v296_v18  ;;  %v1247_v18 = vpack.c.bf16 %v819_v17, %v818_v16  ;;  %1258 = vmatprep.subr.bf16.mxu1 %v1376_v0 }
 0x2f5   :  { %v665_v39 = vadd.f32 %v664_v34, %v663_v32  ;;  %v684_v40 = vsel %vm75_vm1, %v662_v35, 0.0  ;;  %v1039_v32 = vld [vmem:[%s1703_s7] ss:$0 sm:$0xff] }
 0x2f6   :  { %v673_v41 = vrot.slane %v672_v37, 2  ;;  %v685_v42 = vrot.slane %v684_v40, 4  ;;  %v677_v43 = vsel %vm75_vm1, %v661_v38, 0.0  ;;  %v1040_v34 = vld [vmem:[%s1704_s8] ss:$0 sm:$0xff]  ;;  %v912_v38 = vld [vmem:[%s1707_s11 + $0x38] sm:$0xff] }
 0x2f7   :  { %v666_v44 = vrot.slane %v665_v39, 2  ;;  %v678_v45 = vrot.slane %v677_v43, 4 }
 0x2f8   :  { %v674_v46 = vadd.f32 %v673_v41, %v672_v37  ;;  %v686_v47 = vadd.f32 %v685_v42, %v684_v40  ;;  %v911_v37 = vld [vmem:[%s1707_s11 + $0x30] sm:$0xff]  ;;  %v913_v40 = vld [vmem:[%s1707_s11 + $0x40] sm:$0xff]  ;;  %v914_v41 = vld [vmem:[%s1707_s11 + $0x48] sm:$0xff] }
 0x2f9   :  { %v667_v48 = vadd.f32 %v666_v44, %v665_v39  ;;  %v679_v49 = vadd.f32 %v678_v45, %v677_v43  ;;  %v1259_v39 = vpack.c.bf16 %v912_v38, %v911_v37  ;;  %v1262_v42 = vpack.c.bf16 %v914_v41, %v913_v40  ;;  %v915_v43 = vld [vmem:[%s1707_s11 + $0x50] sm:$0xff]  ;;  %v916_v44 = vld [vmem:[%s1707_s11 + $0x58] sm:$0xff] }
 0x2fa   :  { %v675_v50 = vrot.slane %v674_v46, 1  ;;  %v687_v51 = vrot.slane %v686_v47, 2  ;;  %v1265_v45 = vpack.c.bf16 %v916_v44, %v915_v43 }
 0x2fb   :  { %v668_v52 = vrot.slane %v667_v48, 1  ;;  %v680_v53 = vrot.slane %v679_v49, 2  ;;  %1260 = vmatpush3.bf16.msra.mxu1 %v1259_v39 }
 0x2fc   :  { %v676_v54 = vadd.f32 %v675_v50, %v674_v46  ;;  %v688_v55 = vadd.f32 %v687_v51, %v686_v47  ;;  %1261 = vmatprep.subr.bf16.mxu1 %v1376_v0  ;;  %v917_v46 = vld [vmem:[%s1707_s11 + $0x60] sm:$0xff]  ;;  %v918_v47 = vld [vmem:[%s1707_s11 + $0x68] sm:$0xff]  ;;  %v920_v50 = vld [vmem:[%s1707_s11 + $0x78] sm:$0xff] }
 0x2fd   :  { %v669_v56 = vadd.f32 %v668_v52, %v667_v48  ;;  %v681_v57 = vadd.f32 %v680_v53, %v679_v49  ;;  %v1268_v48 = vpack.c.bf16 %v918_v47, %v917_v46  ;;  %v919_v49 = vld [vmem:[%s1707_s11 + $0x70] sm:$0xff]  ;;  %v1041_v52 = vld [vmem:[%s1706_s10] ss:$0 sm:$0xff]  ;;  %s1382_s11 = smov [#allocation7]  }
 0x2fe   :  { %v689_v58 = vrot.slane %v688_v55, 1  ;;  %v1271_v51 = vpack.c.bf16 %v920_v50, %v919_v49  ;;  %s1006_s21 = sshll.u32 %s1382_s11, 4  ;;  %s1007_s21 = int_to_ptr.vmem [resolvable:$true] %s1006_s21 }
 0x2ff   :  { %v707_v59 = vsel %vm706_vm6, %v676_v54, %v669_v56  ;;  %v682_v60 = vrot.slane %v681_v57, 1  ;;  %1263 = vmatpush3.bf16.msra.mxu1 %v1262_v42  ;;  %s1346_s10 = scalar_lea.vmem %s1007_s21, 64  ;;  %p1351_p3 = scmp.lt.s32.totalorder %s1007_s21, %s1007_s21 }
 0x300   :  { %v690_v62 = vadd.f32 %v689_v58, %v688_v55  ;;  %1264 = vmatprep.subr.bf16.mxu1 %v1376_v0  ;;  %p1347_p2 = scmp.ne.s32.totalorder %s1007_s21, %s1346_s10  ;;  %p1352_p4 = scmp.lt.s32.totalorder %s1346_s10, %s1346_s10 }
 0x301   :  { %v683_v61 = vadd.f32 %v682_v60, %v681_v57  ;;  %v1043_v60 = vld [vmem:[%s1708_s12] ss:$0 sm:$0xff] }
 0x302   :  { %p1353_p5 = por %p1352_p4, %p1351_p3 }
 0x303   :  { %v709_v63 = vsel %vm708_vm7, %v683_v61, %v707_v59  ;;  %1266 = vmatpush3.bf16.msra.mxu1 %v1265_v45 }
 0x304   :  { %v711_v2 = vsel %vm710_vm8, %v690_v62, %v709_v63  ;;  %1267 = vmatprep.subr.bf16.mxu1 %v1376_v0  ;;  %p1354_p6 = pnand %p1353_p5, %p1347_p2 }
 0x305   :  { %1163 = vmatmul.mubr.msk.f32.vlgmr.msra.gmra.mrb[10].mxu0 %vm75_vm1, %v711_v2 }
 0x306   :  { %1173 = vmatprep.mubr.msk.f32.mxu0 %vm1377_vm0, %v1378_v1 }
 0x307   :  { %1269 = vmatpush3.bf16.msra.mxu1 %v1268_v48 }
 0x308   :  { %1270 = vmatprep.subr.bf16.mxu1 %v1376_v0 }
 0x30b   :  { %1272 = vmatpush3.bf16.msra.mxu1 %v1271_v51 }
 0x3d8   :  { %v780_v4 = vpop.f32.mrb[10].mxu0 }
 0x3d9   :  { %v781_v5 = vadd.f32 %v1037_v3, %v780_v4  ;;  %v1164_v6 = vpop.f32.mrb[11].mxu0 }
 0x3db   :  { %v1595_v7 = vadd.f32 %v781_v5, %v1499_v10  ;;  %v817_v10 = vld [vmem:[%s1705_s9 + $0x8] sm:$0xff] }
 0x3dc   :  { %v1244_v15 = vpack.c.bf16 %v817_v10, %v816_v14 }
 0x3dd   :  { %v786_v8 = vsel %vm785_vm9, %v1595_v7, 0.0 }
 0x3de   :  { %787 = vadd.xlane.f32.xlu0 %v786_v8  ;;  %1245 = vmatpush3.bf16.msra.mxu0 %v1244_v15 }
 0x3df   :  { %1246 = vmatprep.subr.bf16.mxu0 %v1376_v0 }
 0x3e2   :  { %1248 = vmatpush3.bf16.msra.mxu0 %v1247_v18 }
 0x46b   :  { %v788_v9 = vpop.xlane.xlu0 %787 }
 0x46c   :  { %v790_v11 = vmul.f32 0.03125, %v788_v9 }
 0x46e   :  { %v791_v12 = vsub.f32 %v1595_v7, %v790_v11 }
 0x470   :  { %v792_v1 = vmul.f32 %v791_v12, %v791_v12 }
 0x472   :  { %v793_v13 = vsel %vm785_vm9, %v792_v1, 0.0 }
 0x473   :  { %794 = vadd.xlane.f32.xlu0 %v793_v13 }
 0x500   :  { %v795_v28 = vpop.xlane.xlu0 %794 }
 0x501   :  { %v796_v29 = vmul.f32 0.03125, %v795_v28 }
 0x503   :  { %v797_v30 = vadd.f32 1e-05, %v796_v29 }
 0x505   :  { %1298 = vrsqrt.f32 %v797_v30 }
 0x50f   :  { %v1299_v31 = vpop.eup %1298 }
 0x510   :  { %v799_v33 = vmul.f32 %v1299_v31, %v791_v12 }
 0x512   :  { %v807_v35 = vmul.f32 %v1039_v32, %v799_v33 }
 0x514   :  { %v815_v36 = vadd.f32 %v1040_v34, %v807_v35 }
 0x516   :  { %1174 = vmatmul.mubr.msk.f32.vlgmr.msra.gmra.mrb[12].mxu0 %vm75_vm1, %v815_v36 }
 0x5e9   :  { %v896_v53 = vpop.f32.mrb[12].mxu0 }
 0x5ea   :  { %v897_v54 = vadd.f32 %v1041_v52, %v896_v53  ;;  %v1175_v55 = vpop.f32.mrb[13].mxu0 }
 0x5ec   :  { %v901_v56 = vmul.f32 0.70710677, %v897_v54  ;;  %v900_v57 = vmul.f32 0.5, %v897_v54 }
 0x5ee   :  { %1300 = verf.f32 %v901_v56 }
 0x5f8   :  { %v1301_v0 = vpop.eup %1300 }
 0x5f9   :  { %v903_v58 = vadd.f32 1.0, %v1301_v0 }
 0x5fb   :  { %v904_v59 = vmul.f32 %v903_v58, %v900_v57 }
 0x5fd   :  { %1209 = vmatmul.mubr.f32.vlgmr.msra.gmra.mrb[4].mxu1 %v904_v59 }
 0x6d0   :  { %v994_v61 = vpop.f32.mrb[4].mxu1 }
 0x6d1   :  { %v995_v62 = vadd.f32 %v1043_v60, %v994_v61  ;;  %v1210_v63 = vpop.f32.mrb[5].mxu1 }
 0x6d3   :  { %v998_v2 = vadd.f32 %v995_v62, %v1595_v7 }
 0x6d5   :  { %999 = vst.msk [vmem:[#allocation7] sm:$0xf] %vm785_vm9, %v998_v2 }
 0x6d6   :  { %1357 = shalt.err (!%p1354_p6)
}
 0x6d7   :  { %s1358_s12 = scalar_lea.hbm %s1709_s13, 64 }
 0x6d8   :  { %p1359_p7 = scmp.ne.s32.totalorder %s1709_s13, %s1358_s12  ;;  %p1362_p8 = scmp.lt.u32.totalorder %s1358_s12, %s1709_s13 }
 0x6da   :  { %p1364_p9 = pnand %p1362_p8, %p1359_p7 }
 0x6dc   :  { %1367 = shalt.err (!%p1364_p9)
}
 0x6dd   :  { %1009 = dma.vmem_to_hbm [thread:$0]  %s1007_s21, 64, %s1709_s13, [#allocation4]  }
 0x6de   :  { %1372 = dma.done.wait [#allocation4], 64  }
 0x6df   :  { %1373 = vsyncadd [#allocation4], 4294967232 }
 0x6e0   :  { %1013 = vsyncpa [#allocation3], 1 }
 0x6e1   :  { %1014 = vsyncpa [#allocation6], 1 }
 0x6e2   :  { %1015 = vsyncpa [#allocation4], 1 }

</bundles_post_ra>
